<compile_context>
chip_gen: v5e
topology: v5e:2x2
jax: 0.10.0
libtpu: 0.0.40
codegen_flags: <defaults>
</compile_context>

<pallas_src>
import functools

import jax
import jax.numpy as jnp
from jax.experimental import pallas as pl
from jax.experimental.pallas import tpu as pltpu


# ----------------------------------------------------------------------------
# Fused forward kernel
# ----------------------------------------------------------------------------
def _gcn_vae_fused_kernel(x_ref, adj_ref, w1_ref, w23_ref, recon_ref, mulv_ref):
    x = x_ref[...]        # (N, F)       bf16
    adj = adj_ref[...]    # (N, N)       bf16
    w1 = w1_ref[...]      # (F, H1)      bf16
    w23 = w23_ref[...]    # (H1, 2*H2)   bf16  = [W2 | W3]

    # --- gc1: hidden1 = relu(adj @ (x @ W1)) --------------------------------
    s1 = jnp.dot(x, w1, preferred_element_type=jnp.float32)              # (N, H1) f32
    h1 = jnp.dot(adj, s1.astype(jnp.bfloat16),
                 preferred_element_type=jnp.float32)                     # (N, H1) f32
    h1 = jnp.maximum(h1, 0.0)                                            # relu (VPU, f32)
    h1_bf = h1.astype(jnp.bfloat16)                                      # stays in VMEM/vregs

    # --- gc2 + gc3 fused: [mu|logvar] = adj @ (hidden1 @ [W2|W3]) -----------
    s23 = jnp.dot(h1_bf, w23, preferred_element_type=jnp.float32)        # (N, 2*H2) f32
    mulv = jnp.dot(adj, s23.astype(jnp.bfloat16),
                   preferred_element_type=jnp.float32)                   # (N, 2*H2) f32

    # single lane-dense store; mu/logvar split happens in the wrapper (free)
    mulv_ref[...] = mulv

    # --- decoder: z = mu (eval), recon = z @ z.T -----------------------------
    hidden_dim2 = mulv.shape[1] // 2
    z = mulv[:, :hidden_dim2].astype(jnp.bfloat16)                       # (N, H2) bf16
    zt = z.T                                                             # one explicit (tiny) transpose
    recon = jnp.dot(z, zt, preferred_element_type=jnp.float32)           # (N, N) f32 acc
    recon_ref[...] = recon.astype(recon_ref.dtype)                       # store bf16


# ----------------------------------------------------------------------------
# Wrapper
# ----------------------------------------------------------------------------
def gcn_model_vae_forward(params, x, adj):
    """Eval-mode forward of GCNModelVAE. Returns (recon_adj, mu, logvar)."""
    N, F = x.shape
    H1 = params["w1"].shape[1]
    H2 = params["w2"].shape[1]
    H2x2 = 2 * H2

    # bf16 operands at the kernel boundary; f32 accumulation inside the kernel.
    x_bf = x.astype(jnp.bfloat16)
    adj_bf = adj.astype(jnp.bfloat16)
    w1_bf = params["w1"].astype(jnp.bfloat16)
    w23_bf = jnp.concatenate([params["w2"], params["w3"]],
                             axis=1).astype(jnp.bfloat16)

    flops = 2 * (N * F * H1 + N * N * H1          # gc1
                 + N * H1 * H2x2 + N * N * H2x2   # gc2+gc3 fused
                 + N * N * H2)                    # decoder
    bytes_accessed = (
        2 * (x_bf.size + adj_bf.size + w1_bf.size + w23_bf.size)  # bf16 reads
        + 2 * N * N                                               # bf16 recon write
        + 4 * N * H2x2                                            # f32 [mu|logvar] write
    )

    recon, mulv = pl.pallas_call(
        _gcn_vae_fused_kernel,
        out_shape=(
            jax.ShapeDtypeStruct((N, N), jnp.bfloat16),     # recon (bf16 -> half HBM write)
            jax.ShapeDtypeStruct((N, H2x2), jnp.float32),   # [mu | logvar], lane-dense
        ),
        grid_spec=pltpu.PrefetchScalarGridSpec(
            num_scalar_prefetch=0,
            grid=(1,),
            in_specs=[
                pl.BlockSpec((N, F), lambda i: (0, 0)),
                pl.BlockSpec((N, N), lambda i: (0, 0)),
                pl.BlockSpec((F, H1), lambda i: (0, 0)),
                pl.BlockSpec((H1, H2x2), lambda i: (0, 0)),
            ],
            out_specs=[
                pl.BlockSpec((N, N), lambda i: (0, 0)),
                pl.BlockSpec((N, H2x2), lambda i: (0, 0)),
            ],
        ),
        compiler_params=pltpu.CompilerParams(
            dimension_semantics=("arbitrary",)),
        cost_estimate=pl.CostEstimate(flops=flops, transcendentals=0,
                                      bytes_accessed=bytes_accessed),
    )(x_bf, adj_bf, w1_bf, w23_bf)

    # free layout plumbing outside the kernel
    mu = mulv[:, :H2]
    logvar = mulv[:, H2:]
    return recon, mu, logvar
    # TODO(synk): training-mode dropout + gaussian reparameterization not
    # implemented (forward above reproduces module.eval() semantics).


# ----------------------------------------------------------------------------
# Parameter init (matches gae GraphConvolution glorot/xavier-uniform)
# ----------------------------------------------------------------------------
def glorot_init(key, shape):
    fan_in, fan_out = shape
    limit = jnp.sqrt(6.0 / (fan_in + fan_out))
    return jax.random.uniform(key, shape, jnp.float32, -limit, limit)


def init_params(key, input_feat_dim, hidden_dim1, hidden_dim2):
    k1, k2, k3 = jax.random.split(key, 3)
    return {
        "w1": glorot_init(k1, (input_feat_dim, hidden_dim1)),
        "w2": glorot_init(k2, (hidden_dim1, hidden_dim2)),
        "w3": glorot_init(k3, (hidden_dim1, hidden_dim2)),
    }


if __name__ == "__main__":
    key = jax.random.PRNGKey(0)
    kx, kadj, kparam = jax.random.split(key, 3)

    # small graph: N=128 nodes, input feats=64, hidden1=32, hidden2=16
    N, F_IN, H1, H2 = 128, 64, 32, 16

    x = jax.random.normal(kx, (N, F_IN), jnp.float32)
    # symmetric normalized-ish adjacency (dense), deterministic
    a = jax.random.uniform(kadj, (N, N), jnp.float32)
    adj = (a + a.T) * 0.5 + jnp.eye(N, dtype=jnp.float32)
    adj = adj / jnp.sum(adj, axis=1, keepdims=True)

    params = init_params(kparam, F_IN, H1, H2)

    recon, mu, logvar = gcn_model_vae_forward(params, x, adj)
    jax.block_until_ready((recon, mu, logvar))

    # sanity check vs. plain-JAX reference mirroring the kernel's bf16-operand /
    # f32-accumulate rounding steps
    bf = lambda t: t.astype(jnp.bfloat16).astype(jnp.float32)
    xb, adjb = bf(x), bf(adj)
    w1b, w2b, w3b = bf(params["w1"]), bf(params["w2"]), bf(params["w3"])
    h1_ref = jnp.maximum(adjb @ bf(xb @ w1b), 0.0)
    h1b = bf(h1_ref)
    mu_ref = adjb @ bf(h1b @ w2b)
    logvar_ref = adjb @ bf(h1b @ w3b)
    zb = bf(mu_ref)
    recon_ref = bf(zb @ zb.T)          # kernel stores recon in bf16

    assert jnp.allclose(mu, mu_ref, atol=2e-2, rtol=2e-2)
    assert jnp.allclose(logvar, logvar_ref, atol=2e-2, rtol=2e-2)
    assert jnp.allclose(recon.astype(jnp.float32), recon_ref, atol=5e-2, rtol=5e-2)

    print("KERNEL_OK")
</pallas_src>

<mosaic_0001>
module attributes {stable_mosaic.version = 11 : i64} {
  func.func @_gcn_vae_fused_kernel(%arg0: i32, %arg1: memref<128x64xbf16, #tpu.memory_space<vmem>>, %arg2: memref<128x128xbf16, #tpu.memory_space<vmem>>, %arg3: memref<64x32xbf16, #tpu.memory_space<vmem>>, %arg4: memref<32x32xbf16, #tpu.memory_space<vmem>>, %arg5: memref<128x128xbf16, #tpu.memory_space<vmem>>, %arg6: memref<128x32xf32, #tpu.memory_space<vmem>>) attributes {dimension_semantics = [#tpu.dimension_semantics<arbitrary>], iteration_bounds = array<i64: 1>, scalar_prefetch = 0 : i64, scratch_operands = 0 : i64, tpu.core_type = #tpu.core_type<tc>, window_params = [{pipeline_mode = #tpu.pipeline_mode<synchronous>, transform_indices = @transform_0, window_bounds = array<i64: 128, 64>}, {pipeline_mode = #tpu.pipeline_mode<synchronous>, transform_indices = @transform_1, window_bounds = array<i64: 128, 128>}, {pipeline_mode = #tpu.pipeline_mode<synchronous>, transform_indices = @transform_2, window_bounds = array<i64: 64, 32>}, {pipeline_mode = #tpu.pipeline_mode<synchronous>, transform_indices = @transform_3, window_bounds = array<i64: 32, 32>}, {pipeline_mode = #tpu.pipeline_mode<synchronous>, transform_indices = @transform_4, window_bounds = array<i64: 128, 128>}, {pipeline_mode = #tpu.pipeline_mode<synchronous>, transform_indices = @transform_5, window_bounds = array<i64: 128, 32>}]} {
    %c0 = arith.constant 0 : index
    %c0_0 = arith.constant 0 : index
    %0 = vector.load %arg1[%c0, %c0_0] : memref<128x64xbf16, #tpu.memory_space<vmem>>, vector<128x64xbf16>
    %c0_1 = arith.constant 0 : index
    %c0_2 = arith.constant 0 : index
    %1 = vector.load %arg2[%c0_1, %c0_2] : memref<128x128xbf16, #tpu.memory_space<vmem>>, vector<128x128xbf16>
    %c0_3 = arith.constant 0 : index
    %c0_4 = arith.constant 0 : index
    %2 = vector.load %arg3[%c0_3, %c0_4] : memref<64x32xbf16, #tpu.memory_space<vmem>>, vector<64x32xbf16>
    %c0_5 = arith.constant 0 : index
    %c0_6 = arith.constant 0 : index
    %3 = vector.load %arg4[%c0_5, %c0_6] : memref<32x32xbf16, #tpu.memory_space<vmem>>, vector<32x32xbf16>
    %cst = arith.constant dense<0.000000e+00> : vector<128x32xf32>
    %4 = tpu.matmul %0, %2, %cst {dimension_numbers = #tpu.dot_dimension_numbers<[1], [0], [0], [1], [0, 0, 1, 1], [], []>} : vector<128x64xbf16>, vector<64x32xbf16>, vector<128x32xf32> -> vector<128x32xf32>
    %5 = arith.truncf %4 : vector<128x32xf32> to vector<128x32xbf16>
    %cst_7 = arith.constant dense<0.000000e+00> : vector<128x32xf32>
    %6 = tpu.matmul %1, %5, %cst_7 {dimension_numbers = #tpu.dot_dimension_numbers<[1], [0], [0], [1], [0, 0, 1, 1], [], []>} : vector<128x128xbf16>, vector<128x32xbf16>, vector<128x32xf32> -> vector<128x32xf32>
    %cst_8 = arith.constant 0.000000e+00 : f32
    %7 = vector.broadcast %cst_8 : f32 to vector<128x32xf32>
    %8 = arith.maximumf %6, %7 : vector<128x32xf32>
    %9 = arith.truncf %8 : vector<128x32xf32> to vector<128x32xbf16>
    %cst_9 = arith.constant dense<0.000000e+00> : vector<128x32xf32>
    %10 = tpu.matmul %9, %3, %cst_9 {dimension_numbers = #tpu.dot_dimension_numbers<[1], [0], [0], [1], [0, 0, 1, 1], [], []>} : vector<128x32xbf16>, vector<32x32xbf16>, vector<128x32xf32> -> vector<128x32xf32>
    %11 = arith.truncf %10 : vector<128x32xf32> to vector<128x32xbf16>
    %cst_10 = arith.constant dense<0.000000e+00> : vector<128x32xf32>
    %12 = tpu.matmul %1, %11, %cst_10 {dimension_numbers = #tpu.dot_dimension_numbers<[1], [0], [0], [1], [0, 0, 1, 1], [], []>} : vector<128x128xbf16>, vector<128x32xbf16>, vector<128x32xf32> -> vector<128x32xf32>
    %c0_11 = arith.constant 0 : index
    %c0_12 = arith.constant 0 : index
    %13 = vector.load %arg6[%c0_11, %c0_12] : memref<128x32xf32, #tpu.memory_space<vmem>>, vector<128x32xf32>
    tpu.vector_store %arg6[%c0_11, %c0_12], %12 {strides = array<i32>} : memref<128x32xf32, #tpu.memory_space<vmem>>, vector<128x32xf32>,
    %14 = vector.extract_strided_slice %12 {offsets = [0, 0], sizes = [128, 16], strides = [1, 1]} : vector<128x32xf32> to vector<128x16xf32>
    %15 = arith.truncf %14 : vector<128x16xf32> to vector<128x16xbf16>
    %16 = tpu.transpose %15, [1, 0] : vector<128x16xbf16> -> vector<16x128xbf16>
    %cst_13 = arith.constant dense<0.000000e+00> : vector<128x128xf32>
    %17 = tpu.matmul %15, %16, %cst_13 {dimension_numbers = #tpu.dot_dimension_numbers<[1], [0], [0], [1], [0, 0, 1, 1], [], []>} : vector<128x16xbf16>, vector<16x128xbf16>, vector<128x128xf32> -> vector<128x128xf32>
    %18 = arith.truncf %17 : vector<128x128xf32> to vector<128x128xbf16>
    %c0_14 = arith.constant 0 : index
    %c0_15 = arith.constant 0 : index
    %19 = vector.load %arg5[%c0_14, %c0_15] : memref<128x128xbf16, #tpu.memory_space<vmem>>, vector<128x128xbf16>
    tpu.vector_store %arg5[%c0_14, %c0_15], %18 {strides = array<i32>} : memref<128x128xbf16, #tpu.memory_space<vmem>>, vector<128x128xbf16>,
    return
  }
  func.func @transform_0(%arg0: i32) -> (i32, i32) {
    %c0_i32 = arith.constant 0 : i32
    %c0_i32_0 = arith.constant 0 : i32
    %c0_i32_1 = arith.constant 0 : i32
    return %c0_i32, %c0_i32_0 : i32, i32
  }
  func.func @transform_1(%arg0: i32) -> (i32, i32) {
    %c0_i32 = arith.constant 0 : i32
    %c0_i32_0 = arith.constant 0 : i32
    %c0_i32_1 = arith.constant 0 : i32
    return %c0_i32, %c0_i32_0 : i32, i32
  }
  func.func @transform_2(%arg0: i32) -> (i32, i32) {
    %c0_i32 = arith.constant 0 : i32
    %c0_i32_0 = arith.constant 0 : i32
    %c0_i32_1 = arith.constant 0 : i32
    return %c0_i32, %c0_i32_0 : i32, i32
  }
  func.func @transform_3(%arg0: i32) -> (i32, i32) {
    %c0_i32 = arith.constant 0 : i32
    %c0_i32_0 = arith.constant 0 : i32
    %c0_i32_1 = arith.constant 0 : i32
    return %c0_i32, %c0_i32_0 : i32, i32
  }
  func.func @transform_4(%arg0: i32) -> (i32, i32) {
    %c0_i32 = arith.constant 0 : i32
    %c0_i32_0 = arith.constant 0 : i32
    %c0_i32_1 = arith.constant 0 : i32
    return %c0_i32, %c0_i32_0 : i32, i32
  }
  func.func @transform_5(%arg0: i32) -> (i32, i32) {
    %c0_i32 = arith.constant 0 : i32
    %c0_i32_0 = arith.constant 0 : i32
    %c0_i32_1 = arith.constant 0 : i32
    return %c0_i32, %c0_i32_0 : i32, i32
  }
}

</mosaic_0001>

<bundles_post_ra>
// kernel: tpu_custom_call.1
= control target key start
LH: loop header
LB: loop body
LE: loop exit
PB: predicated region body
PF: predicated region fallthrough
CT: control target
= control target key end

     0   :  { %s1071_s0 = inlined_call_operand.vmem [shape: bf16[128,64], index: 0, kind: input, shape index: {}]   ;;  %s1072_s1 = inlined_call_operand.vmem [shape: bf16[128,128], index: 1, kind: input, shape index: {}]   ;;  %s1073_s2 = inlined_call_operand.vmem [shape: bf16[64,32], index: 2, kind: input, shape index: {}]   ;;  %s1074_s3 = inlined_call_operand.vmem [shape: bf16[32,32], index: 3, kind: input, shape index: {}]   ;;  %s1075_s4 = inlined_call_operand.hbm [shape: bf16[128,128], index: 4, kind: output, shape index: {0}]   ;;  %s1076_s5 = inlined_call_operand.vmem [shape: f32[128,32], index: 5, kind: output, shape index: {1}]  }
   0x1   :  { %v758_v0 = vld [vmem:[%s1073_s2 + $0x18] sm:$0xff]  ;;  %v757_v1 = vld [vmem:[%s1073_s2 + $0x10] sm:$0xff] }
   0x2   :  { %158 = vmatpush.bf16.msra.mxu0 %v758_v0 }
   0x3   :  { %11 = vsyncpa [#allocation3], 0  ;;  %v756_v2 = vld [vmem:[%s1073_s2 + $0x8] sm:$0xff]  ;;  %v755_v3 = vld [vmem:[%s1073_s2] sm:$0xff]  ;;  %vm129_vm0 = vcmask 523264   ;;  %vm344_vm1 = vcmask 261120  }
   0x4   :  { %v739_v4 = vld [vmem:[%s1071_s0] sm:$0xff]  ;;  %v740_v5 = vld [vmem:[%s1071_s0 + $0x8] sm:$0xff]  ;;  %v741_v6 = vld [vmem:[%s1071_s0 + $0x10] sm:$0xff]  ;;  %vm499_vm2 = vcmask 130048   ;;  %s611_s13 = sshll.u32 %s1075_s4, 4  ;;  %s850_s14 = smov 64   ;;  %s612_s13 = int_to_ptr.hbm [resolvable:$true] %s611_s13 }
   0x5   :  { %v742_v7 = vld [vmem:[%s1071_s0 + $0x18] sm:$0xff]  ;;  %v743_v8 = vld [vmem:[%s1071_s0 + $0x20] sm:$0xff]  ;;  %v744_v9 = vld [vmem:[%s1071_s0 + $0x28] sm:$0xff]  ;;  %s851_s15 = smov 4  }
   0x6   :  { %159 = vmatpush.bf16.msra.mxu0 %v757_v1  ;;  %v745_v10 = vld [vmem:[%s1071_s0 + $0x30] sm:$0xff]  ;;  %v746_v11 = vld [vmem:[%s1071_s0 + $0x38] sm:$0xff]  ;;  %v921_v36 = vld [vmem:[%s1072_s1] sm:$0xff] }
   0x7   :  { %v927_v37 = vld [vmem:[%s1072_s1 + $0x8] sm:$0xff]  ;;  %v933_v38 = vld [vmem:[%s1072_s1 + $0x10] sm:$0xff]  ;;  %v939_v39 = vld [vmem:[%s1072_s1 + $0x18] sm:$0xff] }
   0x8   :  { %v945_v40 = vld [vmem:[%s1072_s1 + $0x20] sm:$0xff]  ;;  %v951_v41 = vld [vmem:[%s1072_s1 + $0x28] sm:$0xff]  ;;  %v960_v43 = vld [vmem:[%s1072_s1 + $0x30] sm:$0xff] }
   0x9   :  { %v760_v42 = vld [vmem:[%s1074_s3 + $0x8] sm:$0xff]  ;;  %v759_v44 = vld [vmem:[%s1074_s3] sm:$0xff]  ;;  %v969_v45 = vld [vmem:[%s1072_s1 + $0x38] sm:$0xff] }
   0xa   :  { %160 = vmatpush.bf16.msra.mxu0 %v756_v2  ;;  %809 = vmatpush.bf16.msra.mxu2 %v760_v42 }
   0xe   :  { %161 = vmatpush.bf16.msra.mxu0 %v755_v3  ;;  %811 = vmatpush.bf16.msra.mxu2 %v759_v44 }
  0x11   :  { %675 = vmatmul.msk.bf16.vlgmr.msra.gmra.mxu0 %vm129_vm0, %v739_v4 }
  0x12   :  { %375 = vmatpush.bf16.msrb.mxu0 %v760_v42 }
  0x16   :  { %376 = vmatpush.bf16.msrb.mxu0 %v759_v44 }
  0x21   :  { %676 = vmatmul.msk.bf16.gmra.mxu0 %vm129_vm0, %v740_v5 }
  0x31   :  { %677 = vmatmul.msk.bf16.gmra.mxu0 %vm129_vm0, %v741_v6 }
  0x41   :  { %678 = vmatmul.msk.bf16.gmra.mxu0 %vm129_vm0, %v742_v7 }
  0x51   :  { %679 = vmatmul.msk.bf16.gmra.mxu0 %vm129_vm0, %v743_v8 }
  0x61   :  { %680 = vmatmul.msk.bf16.gmra.mxu0 %vm129_vm0, %v744_v9 }
  0x71   :  { %681 = vmatmul.msk.bf16.gmra.mxu0 %vm129_vm0, %v745_v10 }
  0x81   :  { %682 = vmatmul.msk.bf16.gmra.mxu0 %vm129_vm0, %v746_v11 }
  0x8e   :  { %v163_v12 = vpop.f32.mrf.mxu0 }
  0x96   :  { %v165_v13 = vpop.f32.mrf.mxu0 }
  0x97   :  { %v203_v14 = vpack.c.bf16 %v165_v13, %v163_v12 }
  0x9e   :  { %v168_v15 = vpop.f32.mrf.mxu0 }
  0xa6   :  { %v170_v16 = vpop.f32.mrf.mxu0 }
  0xa7   :  { %v204_v17 = vpack.c.bf16 %v170_v16, %v168_v15 }
  0xae   :  { %v173_v18 = vpop.f32.mrf.mxu0 }
  0xb6   :  { %v175_v19 = vpop.f32.mrf.mxu0 }
  0xb7   :  { %v205_v20 = vpack.c.bf16 %v175_v19, %v173_v18 }
  0xbe   :  { %v178_v21 = vpop.f32.mrf.mxu0 }
  0xc6   :  { %v180_v22 = vpop.f32.mrf.mxu0 }
  0xc7   :  { %v206_v23 = vpack.c.bf16 %v180_v22, %v178_v21 }
  0xce   :  { %v183_v24 = vpop.f32.mrf.mxu0 }
  0xd6   :  { %v185_v25 = vpop.f32.mrf.mxu0 }
  0xd7   :  { %v207_v35 = vpack.c.bf16 %v185_v25, %v183_v24 }
  0xde   :  { %v188_v26 = vpop.f32.mrf.mxu0 }
  0xe6   :  { %v190_v27 = vpop.f32.mrf.mxu0 }
  0xe7   :  { %v208_v34 = vpack.c.bf16 %v190_v27, %v188_v26 }
  0xee   :  { %v193_v28 = vpop.f32.mrf.mxu0 }
  0xf6   :  { %v195_v29 = vpop.f32.mrf.mxu0 }
  0xf7   :  { %v209_v33 = vpack.c.bf16 %v195_v29, %v193_v28 }
  0xfe   :  { %v198_v30 = vpop.f32.mrf.mxu0 }
 0x106   :  { %v200_v31 = vpop.f32.mrf.mxu0 }
 0x107   :  { %v210_v32 = vpack.c.bf16 %v200_v31, %v198_v30 }
 0x109   :  { %259 = vmatpush.bf16.msra.mxu1 %v210_v32 }
 0x10d   :  { %260 = vmatpush.bf16.msra.mxu1 %v209_v33 }
 0x111   :  { %261 = vmatpush.bf16.msra.mxu1 %v208_v34 }
 0x115   :  { %262 = vmatpush.bf16.msra.mxu1 %v207_v35 }
 0x119   :  { %263 = vmatpush.bf16.msra.mxu1 %v206_v23 }
 0x11d   :  { %264 = vmatpush.bf16.msra.mxu1 %v205_v20 }
 0x121   :  { %265 = vmatpush.bf16.msra.mxu1 %v204_v17 }
 0x125   :  { %266 = vmatpush.bf16.msra.mxu1 %v203_v14 }
 0x128   :  { %267 = vmatmul.bf16.vlgmr.msra.gmra.mxu1 %v921_v36 }
 0x129   :  { %808 = vmatpush.bf16.msrb.mxu1 %v760_v42 }
 0x12d   :  { %810 = vmatpush.bf16.msrb.mxu1 %v759_v44 }
 0x138   :  { %272 = vmatmul.bf16.gmra.mxu1 %v927_v37 }
 0x148   :  { %277 = vmatmul.bf16.gmra.mxu1 %v933_v38 }
 0x158   :  { %282 = vmatmul.bf16.gmra.mxu1 %v939_v39 }
 0x168   :  { %287 = vmatmul.bf16.gmra.mxu1 %v945_v40 }
 0x178   :  { %292 = vmatmul.bf16.gmra.mxu1 %v951_v41 }
 0x188   :  { %297 = vmatmul.bf16.gmra.mxu1 %v960_v43 }
 0x198   :  { %302 = vmatmul.bf16.gmra.mxu1 %v969_v45 }
 0x1a5   :  { %v268_v46 = vpop.f32.mrf.mxu1 }
 0x1a6   :  { %v308_v48 = vmax.f32 %v268_v46, 0.0 }
 0x1ad   :  { %v270_v47 = vpop.f32.mrf.mxu1 }
 0x1ae   :  { %v309_v49 = vmax.f32 %v270_v47, 0.0 }
 0x1b0   :  { %v324_v50 = vpack.c.bf16 %v309_v49, %v308_v48 }
 0x1b2   :  { %723 = vmatmul.msk.bf16.vlgmr.msrb.gmra.mxu0 %vm344_vm1, %v324_v50 }
 0x1b5   :  { %v273_v51 = vpop.f32.mrf.mxu1 }
 0x1b6   :  { %v310_v53 = vmax.f32 %v273_v51, 0.0 }
 0x1bd   :  { %v275_v52 = vpop.f32.mrf.mxu1 }
 0x1be   :  { %v311_v54 = vmax.f32 %v275_v52, 0.0 }
 0x1c0   :  { %v325_v55 = vpack.c.bf16 %v311_v54, %v310_v53 }
 0x1c2   :  { %724 = vmatmul.msk.bf16.gmra.mxu0 %vm344_vm1, %v325_v55 }
 0x1c5   :  { %v278_v56 = vpop.f32.mrf.mxu1 }
 0x1c6   :  { %v312_v58 = vmax.f32 %v278_v56, 0.0 }
 0x1cd   :  { %v280_v57 = vpop.f32.mrf.mxu1 }
 0x1ce   :  { %v313_v59 = vmax.f32 %v280_v57, 0.0 }
 0x1d0   :  { %v326_v60 = vpack.c.bf16 %v313_v59, %v312_v58 }
 0x1d2   :  { %725 = vmatmul.msk.bf16.gmra.mxu0 %vm344_vm1, %v326_v60 }
 0x1d5   :  { %v283_v61 = vpop.f32.mrf.mxu1 }
 0x1d6   :  { %v314_v63 = vmax.f32 %v283_v61, 0.0 }
 0x1dd   :  { %v285_v62 = vpop.f32.mrf.mxu1 }
 0x1de   :  { %v315_v0 = vmax.f32 %v285_v62, 0.0 }
 0x1e0   :  { %v327_v1 = vpack.c.bf16 %v315_v0, %v314_v63 }
 0x1e2   :  { %726 = vmatmul.msk.bf16.vlgmr.msrb.gmra.mxu1 %vm344_vm1, %v327_v1 }
 0x1e5   :  { %v288_v2 = vpop.f32.mrf.mxu1 }
 0x1e6   :  { %v316_v4 = vmax.f32 %v288_v2, 0.0 }
 0x1ed   :  { %v290_v3 = vpop.f32.mrf.mxu1 }
 0x1ee   :  { %v317_v5 = vmax.f32 %v290_v3, 0.0 }
 0x1f0   :  { %v328_v6 = vpack.c.bf16 %v317_v5, %v316_v4 }
 0x1f2   :  { %727 = vmatmul.msk.bf16.vlgmr.msra.gmra.mxu2 %vm344_vm1, %v328_v6 }
 0x1f5   :  { %v293_v7 = vpop.f32.mrf.mxu1 }
 0x1f6   :  { %v318_v9 = vmax.f32 %v293_v7, 0.0 }
 0x1fd   :  { %v295_v8 = vpop.f32.mrf.mxu1 }
 0x1fe   :  { %v319_v10 = vmax.f32 %v295_v8, 0.0 }
 0x200   :  { %v329_v11 = vpack.c.bf16 %v319_v10, %v318_v9 }
 0x202   :  { %728 = vmatmul.msk.bf16.gmra.mxu2 %vm344_vm1, %v329_v11 }
 0x205   :  { %v298_v12 = vpop.f32.mrf.mxu1 }
 0x206   :  { %v320_v14 = vmax.f32 %v298_v12, 0.0 }
 0x20d   :  { %v300_v13 = vpop.f32.mrf.mxu1 }
 0x20e   :  { %v321_v15 = vmax.f32 %v300_v13, 0.0 }
 0x210   :  { %v330_v16 = vpack.c.bf16 %v321_v15, %v320_v14 }
 0x212   :  { %729 = vmatmul.msk.bf16.gmra.mxu2 %vm344_vm1, %v330_v16 }
 0x215   :  { %v303_v17 = vpop.f32.mrf.mxu1 }
 0x216   :  { %v322_v19 = vmax.f32 %v303_v17, 0.0 }
 0x21d   :  { %v305_v18 = vpop.f32.mrf.mxu1 }
 0x21e   :  { %v323_v20 = vmax.f32 %v305_v18, 0.0 }
 0x220   :  { %v331_v21 = vpack.c.bf16 %v323_v20, %v322_v19 }
 0x222   :  { %730 = vmatmul.msk.bf16.gmra.mxu2 %vm344_vm1, %v331_v21 }
 0x22f   :  { %v378_v25 = vpop.f32.mrf.mxu0 }
 0x237   :  { %v380_v28 = vpop.f32.mrf.mxu0 }
 0x238   :  { %v418_v53 = vpack.c.bf16 %v380_v28, %v378_v25 }
 0x23f   :  { %v383_v30 = vpop.f32.mrf.mxu0 }
 0x247   :  { %v385_v32 = vpop.f32.mrf.mxu0 }
 0x248   :  { %v419_v52 = vpack.c.bf16 %v385_v32, %v383_v30 }
 0x24f   :  { %v388_v44 = vpop.f32.mrf.mxu0 }
 0x257   :  { %v390_v50 = vpop.f32.mrf.mxu0 }
 0x258   :  { %v420_v51 = vpack.c.bf16 %v390_v50, %v388_v44 }
 0x25f   :  { %v393_v35 = vpop.f32.mrf.mxu1 }
 0x267   :  { %v395_v48 = vpop.f32.mrf.mxu1 }
 0x268   :  { %v421_v49 = vpack.c.bf16 %v395_v48, %v393_v35 }
 0x275   :  { %v398_v22 = vpop.f32.mrf.mxu2 }
 0x27d   :  { %v400_v23 = vpop.f32.mrf.mxu2 }
 0x27e   :  { %v422_v47 = vpack.c.bf16 %v400_v23, %v398_v22 }
 0x285   :  { %v403_v24 = vpop.f32.mrf.mxu2 }
 0x28d   :  { %v405_v26 = vpop.f32.mrf.mxu2 }
 0x28e   :  { %v423_v46 = vpack.c.bf16 %v405_v26, %v403_v24 }
 0x295   :  { %v408_v27 = vpop.f32.mrf.mxu2 }
 0x29d   :  { %v410_v29 = vpop.f32.mrf.mxu2 }
 0x29e   :  { %v424_v42 = vpack.c.bf16 %v410_v29, %v408_v27 }
 0x2a5   :  { %v413_v31 = vpop.f32.mrf.mxu2 }
 0x2ad   :  { %v415_v33 = vpop.f32.mrf.mxu2 }
 0x2ae   :  { %v425_v34 = vpack.c.bf16 %v415_v33, %v413_v31 }
 0x2b0   :  { %426 = vmatpush.bf16.msra.mxu3 %v425_v34 }
 0x2b4   :  { %427 = vmatpush.bf16.msra.mxu3 %v424_v42 }
 0x2b8   :  { %428 = vmatpush.bf16.msra.mxu3 %v423_v46 }
 0x2bc   :  { %429 = vmatpush.bf16.msra.mxu3 %v422_v47 }
 0x2c0   :  { %430 = vmatpush.bf16.msra.mxu3 %v421_v49 }
 0x2c4   :  { %431 = vmatpush.bf16.msra.mxu3 %v420_v51 }
 0x2c8   :  { %432 = vmatpush.bf16.msra.mxu3 %v419_v52 }
 0x2cc   :  { %433 = vmatpush.bf16.msra.mxu3 %v418_v53 }
 0x2cf   :  { %434 = vmatmul.bf16.vlgmr.msra.gmra.mxu3 %v921_v36 }
 0x2df   :  { %439 = vmatmul.bf16.gmra.mxu3 %v927_v37 }
 0x2ef   :  { %444 = vmatmul.bf16.gmra.mxu3 %v933_v38 }
 0x2ff   :  { %449 = vmatmul.bf16.gmra.mxu3 %v939_v39 }
 0x30f   :  { %454 = vmatmul.bf16.gmra.mxu3 %v945_v40 }
 0x31f   :  { %459 = vmatmul.bf16.gmra.mxu3 %v951_v41 }
 0x32f   :  { %464 = vmatmul.bf16.gmra.mxu3 %v960_v43 }
 0x33f   :  { %469 = vmatmul.bf16.gmra.mxu3 %v969_v45 }
 0x352   :  { %v435_v54 = vpop.f32.mrf.mxu3 }
 0x353   :  { %475 = vst.msk [vmem:[%s1076_s5] sm:$0xff] %vm344_vm1, %v435_v54 }
 0x35a   :  { %v437_v36 = vpop.f32.mrf.mxu3 }
 0x35b   :  { %476 = vst.msk [vmem:[%s1076_s5 + $0x8] sm:$0xff] %vm344_vm1, %v437_v36  ;;  %v491_v37 = vpack.c.bf16 %v437_v36, %v435_v54 }
 0x35d   :  { %v501_v13 = vsel %vm499_vm2, %v491_v37, 0 }
 0x362   :  { %v440_v38 = vpop.f32.mrf.mxu3 }
 0x363   :  { %477 = vst.msk [vmem:[%s1076_s5 + $0x10] sm:$0xff] %vm344_vm1, %v440_v38 }
 0x36a   :  { %v442_v39 = vpop.f32.mrf.mxu3 }
 0x36b   :  { %478 = vst.msk [vmem:[%s1076_s5 + $0x18] sm:$0xff] %vm344_vm1, %v442_v39  ;;  %v492_v40 = vpack.c.bf16 %v442_v39, %v440_v38 }
 0x36d   :  { %v504_v12 = vsel %vm499_vm2, %v492_v40, 0 }
 0x372   :  { %v445_v41 = vpop.f32.mrf.mxu3 }
 0x373   :  { %479 = vst.msk [vmem:[%s1076_s5 + $0x20] sm:$0xff] %vm344_vm1, %v445_v41 }
 0x37a   :  { %v447_v43 = vpop.f32.mrf.mxu3 }
 0x37b   :  { %480 = vst.msk [vmem:[%s1076_s5 + $0x28] sm:$0xff] %vm344_vm1, %v447_v43  ;;  %v493_v45 = vpack.c.bf16 %v447_v43, %v445_v41 }
 0x37d   :  { %v507_v11 = vsel %vm499_vm2, %v493_v45, 0 }
 0x382   :  { %v450_v55 = vpop.f32.mrf.mxu3 }
 0x383   :  { %481 = vst.msk [vmem:[%s1076_s5 + $0x30] sm:$0xff] %vm344_vm1, %v450_v55 }
 0x38a   :  { %v452_v56 = vpop.f32.mrf.mxu3 }
 0x38b   :  { %482 = vst.msk [vmem:[%s1076_s5 + $0x38] sm:$0xff] %vm344_vm1, %v452_v56  ;;  %v494_v57 = vpack.c.bf16 %v452_v56, %v450_v55 }
 0x38d   :  { %v510_v10 = vsel %vm499_vm2, %v494_v57, 0 }
 0x392   :  { %v455_v58 = vpop.f32.mrf.mxu3 }
 0x393   :  { %483 = vst.msk [vmem:[%s1076_s5 + $0x40] sm:$0xff] %vm344_vm1, %v455_v58 }
 0x39a   :  { %v457_v59 = vpop.f32.mrf.mxu3 }
 0x39b   :  { %484 = vst.msk [vmem:[%s1076_s5 + $0x48] sm:$0xff] %vm344_vm1, %v457_v59  ;;  %v495_v60 = vpack.c.bf16 %v457_v59, %v455_v58 }
 0x39d   :  { %v513_v9 = vsel %vm499_vm2, %v495_v60, 0 }
 0x3a2   :  { %v460_v61 = vpop.f32.mrf.mxu3 }
 0x3a3   :  { %485 = vst.msk [vmem:[%s1076_s5 + $0x50] sm:$0xff] %vm344_vm1, %v460_v61 }
 0x3aa   :  { %v462_v62 = vpop.f32.mrf.mxu3 }
 0x3ab   :  { %486 = vst.msk [vmem:[%s1076_s5 + $0x58] sm:$0xff] %vm344_vm1, %v462_v62  ;;  %v496_v7 = vpack.c.bf16 %v462_v62, %v460_v61 }
 0x3ad   :  { %v516_v8 = vsel %vm499_vm2, %v496_v7, 0 }
 0x3b2   :  { %v465_v63 = vpop.f32.mrf.mxu3 }
 0x3b3   :  { %487 = vst.msk [vmem:[%s1076_s5 + $0x60] sm:$0xff] %vm344_vm1, %v465_v63 }
 0x3ba   :  { %v467_v0 = vpop.f32.mrf.mxu3 }
 0x3bb   :  { %488 = vst.msk [vmem:[%s1076_s5 + $0x68] sm:$0xff] %vm344_vm1, %v467_v0  ;;  %v497_v5 = vpack.c.bf16 %v467_v0, %v465_v63 }
 0x3bd   :  { %v519_v6 = vsel %vm499_vm2, %v497_v5, 0 }
 0x3c2   :  { %v470_v1 = vpop.f32.mrf.mxu3 }
 0x3c3   :  { %489 = vst.msk [vmem:[%s1076_s5 + $0x70] sm:$0xff] %vm344_vm1, %v470_v1 }
 0x3ca   :  { %v472_v2 = vpop.f32.mrf.mxu3 }
 0x3cb   :  { %490 = vst.msk [vmem:[%s1076_s5 + $0x78] sm:$0xff] %vm344_vm1, %v472_v2  ;;  %v498_v3 = vpack.c.bf16 %v472_v2, %v470_v1  ;;  %s849_s5 = smov [#allocation2]  }
 0x3cc   :  { %s609_s10 = sshll.u32 %s849_s5, 4  ;;  %s610_s10 = int_to_ptr.vmem [resolvable:$true] %s609_s10 }
 0x3cd   :  { %v522_v4 = vsel %vm499_vm2, %v498_v3, 0 }
 0x3ce   :  { %524 = vmatpush.bf16.xpose.msrb.mxu2 %v522_v4  ;;  %812 = vmatpush.bf16.xpose.msrb.mxu3 %v522_v4 }
 0x3d6   :  { %525 = vmatpush.bf16.xpose.msrb.mxu2 %v519_v6  ;;  %813 = vmatpush.bf16.xpose.msrb.mxu3 %v519_v6 }
 0x3de   :  { %526 = vmatpush.bf16.xpose.msrb.mxu2 %v516_v8  ;;  %814 = vmatpush.bf16.xpose.msrb.mxu3 %v516_v8 }
 0x3e6   :  { %527 = vmatpush.bf16.xpose.msrb.mxu2 %v513_v9  ;;  %815 = vmatpush.bf16.xpose.msrb.mxu3 %v513_v9 }
 0x3ee   :  { %528 = vmatpush.bf16.xpose.msrb.mxu2 %v510_v10  ;;  %816 = vmatpush.bf16.xpose.msrb.mxu3 %v510_v10 }
 0x3f6   :  { %529 = vmatpush.bf16.xpose.msrb.mxu2 %v507_v11  ;;  %817 = vmatpush.bf16.xpose.msrb.mxu3 %v507_v11 }
 0x3fe   :  { %530 = vmatpush.bf16.xpose.msrb.mxu2 %v504_v12  ;;  %818 = vmatpush.bf16.xpose.msrb.mxu3 %v504_v12 }
 0x406   :  { %531 = vmatpush.bf16.xpose.msrb.mxu2 %v501_v13  ;;  %819 = vmatpush.bf16.xpose.msrb.mxu3 %v501_v13 }
 0x40d   :  { %731 = vmatmul.msk.bf16.vlgmr.msrb.gmra.mxu2 %vm499_vm2, %v491_v37  ;;  %738 = vmatmul.msk.bf16.vlgmr.msrb.gmra.mxu3 %vm499_vm2, %v498_v3 }
 0x41d   :  { %732 = vmatmul.msk.bf16.gmra.mxu2 %vm499_vm2, %v492_v40 }
 0x42d   :  { %733 = vmatmul.msk.bf16.gmra.mxu2 %vm499_vm2, %v493_v45 }
 0x43d   :  { %734 = vmatmul.msk.bf16.gmra.mxu2 %vm499_vm2, %v494_v57 }
 0x44d   :  { %735 = vmatmul.msk.bf16.gmra.mxu2 %vm499_vm2, %v495_v60 }
 0x45d   :  { %736 = vmatmul.msk.bf16.gmra.mxu2 %vm499_vm2, %v496_v7 }
 0x46d   :  { %737 = vmatmul.msk.bf16.gmra.mxu2 %vm499_vm2, %v497_v5 }
 0x490   :  { %v533_v14 = vpop.f32.mrf.mxu2  ;;  %v568_v15 = vpop.f32.mrf.mxu3 }
 0x498   :  { %v535_v16 = vpop.f32.mrf.mxu2  ;;  %v570_v17 = vpop.f32.mrf.mxu3 }
 0x499   :  { %v764_v18 = vpack.c.bf16 %v535_v16, %v533_v14  ;;  %v799_v19 = vpack.c.bf16 %v570_v17, %v568_v15 }
 0x49b   :  { %765 = vst [vmem:[#allocation2] sm:$0xff] %v764_v18  }
 0x49c   :  { %807 = vst [vmem:[#allocation2 + $0x38] sm:$0xff] %v799_v19  }
 0x4a0   :  { %v538_v20 = vpop.f32.mrf.mxu2 }
 0x4a8   :  { %v540_v21 = vpop.f32.mrf.mxu2 }
 0x4a9   :  { %v769_v22 = vpack.c.bf16 %v540_v21, %v538_v20 }
 0x4ab   :  { %801 = vst [vmem:[#allocation2 + $0x8] sm:$0xff] %v769_v22  }
 0x4b0   :  { %v543_v23 = vpop.f32.mrf.mxu2 }
 0x4b8   :  { %v545_v24 = vpop.f32.mrf.mxu2 }
 0x4b9   :  { %v774_v25 = vpack.c.bf16 %v545_v24, %v543_v23 }
 0x4bb   :  { %802 = vst [vmem:[#allocation2 + $0x10] sm:$0xff] %v774_v25  }
 0x4c0   :  { %v548_v26 = vpop.f32.mrf.mxu2 }
 0x4c8   :  { %v550_v27 = vpop.f32.mrf.mxu2 }
 0x4c9   :  { %v779_v28 = vpack.c.bf16 %v550_v27, %v548_v26 }
 0x4cb   :  { %803 = vst [vmem:[#allocation2 + $0x18] sm:$0xff] %v779_v28  }
 0x4d0   :  { %v553_v29 = vpop.f32.mrf.mxu2 }
 0x4d8   :  { %v555_v30 = vpop.f32.mrf.mxu2 }
 0x4d9   :  { %v784_v31 = vpack.c.bf16 %v555_v30, %v553_v29 }
 0x4db   :  { %804 = vst [vmem:[#allocation2 + $0x20] sm:$0xff] %v784_v31  }
 0x4e0   :  { %v558_v32 = vpop.f32.mrf.mxu2 }
 0x4e8   :  { %v560_v33 = vpop.f32.mrf.mxu2 }
 0x4e9   :  { %v789_v34 = vpack.c.bf16 %v560_v33, %v558_v32 }
 0x4eb   :  { %805 = vst [vmem:[#allocation2 + $0x28] sm:$0xff] %v789_v34  }
 0x4f0   :  { %v563_v35 = vpop.f32.mrf.mxu2 }
 0x4f8   :  { %v565_v42 = vpop.f32.mrf.mxu2 }
 0x4f9   :  { %v794_v44 = vpack.c.bf16 %v565_v42, %v563_v35 }
 0x4fb   :  { %806 = vst [vmem:[#allocation2 + $0x30] sm:$0xff] %v794_v44  }
 0x4fc   :  { %617 = dma.vmem_to_hbm [thread:$0]  %s610_s10, 1024, %s612_s13, [#allocation3], %s850_s14, %s850_s14, %s851_s15  }
 0x4fd   :  { %847 = dma.done.wait [#allocation3], 1024  }
 0x4fe   :  { %848 = vsyncadd [#allocation3], 4294966272 }
 0x4ff   :  { %626 = vsyncpa [#allocation3], 1 }

</bundles_post_ra>
